<compile_context>
chip_gen: v7x
topology: tpu7x:2x2x1
jax: 0.10.0
libtpu: 0.0.40
codegen_flags: <defaults>
</compile_context>

<pallas_src>
import functools

import jax
import jax.numpy as jnp
from jax.experimental import pallas as pl
from jax.experimental.pallas import tpu as pltpu


# ----------------------------------------------------------------------------
# Kernel: constant-pad the image + shift the boxes, in one invocation.
# ----------------------------------------------------------------------------
def _padding_image_kernel(img_ref, boxes_ref, out_img_ref, out_boxes_ref,
                          *, pad, color):
    c_dim, h, w = img_ref.shape
    out_dtype = out_img_ref.dtype

    # Per-channel constant fill composed from scalar constants (color is a
    # static module parameter).
    if all(v == color[0] for v in color):
        canvas_fill = jnp.full(out_img_ref.shape, float(color[0]), out_dtype)
    else:
        ch = jax.lax.broadcasted_iota(jnp.int32, out_img_ref.shape, 0)
        canvas_fill = jnp.full(out_img_ref.shape, float(color[-1]), out_dtype)
        for c in range(c_dim - 1):
            canvas_fill = jnp.where(ch == c, float(color[c]), canvas_fill)

    # 1) Fill the whole padded canvas (single lane-dense, unmasked store).
    out_img_ref[...] = canvas_fill

    # 2) Paste the source image into the interior: result.paste(image, (l, t)).
    #    pad is not (8,128)-aligned, so this store is masked, but it only
    #    touches the (H, W) interior; HBM traffic is unchanged.
    out_img_ref[:, pl.ds(pad, h), pl.ds(pad, w)] = img_ref[...]

    # 3) Box shift folded into the same kernel (no second pallas_call):
    #    shift_coordinates(boxes, -left, -top) == boxes + pad  (left == top).
    out_boxes_ref[...] = boxes_ref[...] + float(pad)


# ----------------------------------------------------------------------------
# Module-equivalent wrapper
# ----------------------------------------------------------------------------
def padding_image_forward(image, target, padding_size=10, color=(255, 255, 255)):
    """Pallas equivalent of PaddingImage.forward.

    image : (C, H, W) float32 array (values in [0, 255])
    target: dict with 'boxes' of shape (N, 4) float32
    """
    C, H, W = image.shape
    P = int(padding_size)
    NH, NW = H + 2 * P, W + 2 * P
    boxes = target["boxes"]
    N = boxes.shape[0]

    kernel = functools.partial(_padding_image_kernel, pad=P, color=tuple(color))

    out_img, out_boxes = pl.pallas_call(
        kernel,
        out_shape=(
            jax.ShapeDtypeStruct((C, NH, NW), image.dtype),
            jax.ShapeDtypeStruct((N, 4), boxes.dtype),
        ),
        # Single invocation (no grid): whole arrays as full blocks in VMEM.
        in_specs=[
            pl.BlockSpec((C, H, W), lambda: (0, 0, 0)),
            pl.BlockSpec((N, 4), lambda: (0, 0)),
        ],
        out_specs=(
            pl.BlockSpec((C, NH, NW), lambda: (0, 0, 0)),
            pl.BlockSpec((N, 4), lambda: (0, 0)),
        ),
        compiler_params=pltpu.CompilerParams(
            vmem_limit_bytes=32 * 1024 * 1024,
        ),
    )(image, boxes)

    new_target = dict(target)
    new_target["boxes"] = out_boxes
    return out_img, new_target


if __name__ == "__main__":
    key = jax.random.PRNGKey(0)
    k_img, k_box = jax.random.split(key)

    C, H, W = 3, 16, 16
    P = 10
    COLOR = (255, 255, 255)

    image = jax.random.uniform(k_img, (C, H, W), jnp.float32, 0.0, 255.0)
    boxes = jax.random.uniform(k_box, (8, 4), jnp.float32, 0.0, 16.0)
    target = {"boxes": boxes}

    result, new_target = padding_image_forward(image, target, P, COLOR)
    result = jax.block_until_ready(result)
    new_boxes = jax.block_until_ready(new_target["boxes"])

    # pure-JAX reference check
    ref_img = jnp.stack([
        jnp.pad(image[c], ((P, P), (P, P)), constant_values=float(COLOR[c]))
        for c in range(C)
    ])
    ref_boxes = boxes + jnp.asarray([[P, P, P, P]], jnp.float32)
    assert result.shape == (C, H + 2 * P, W + 2 * P)
    assert jnp.allclose(result, ref_img)
    assert jnp.allclose(new_boxes, ref_boxes)

    print("KERNEL_OK")
</pallas_src>

<mosaic_0001>
module attributes {stable_mosaic.version = 11 : i64} {
  func.func @_padding_image_kernel(%arg0: memref<3x16x16xf32, #tpu.memory_space<vmem>>, %arg1: memref<8x4xf32, #tpu.memory_space<vmem>>, %arg2: memref<3x36x36xf32, #tpu.memory_space<vmem>>, %arg3: memref<8x4xf32, #tpu.memory_space<vmem>>) attributes {dimension_semantics = [], scalar_prefetch = 0 : i64, scratch_operands = 0 : i64, tpu.core_type = #tpu.core_type<tc>} {
    %cst = arith.constant 2.550000e+02 : f32
    %0 = vector.broadcast %cst : f32 to vector<3x36x36xf32>
    %c0 = arith.constant 0 : index
    %c0_0 = arith.constant 0 : index
    %c0_1 = arith.constant 0 : index
    %1 = vector.load %arg2[%c0, %c0_0, %c0_1] : memref<3x36x36xf32, #tpu.memory_space<vmem>>, vector<3x36x36xf32>
    tpu.vector_store %arg2[%c0, %c0_0, %c0_1], %0 {strides = array<i32>} : memref<3x36x36xf32, #tpu.memory_space<vmem>>, vector<3x36x36xf32>,
    %c0_2 = arith.constant 0 : index
    %c0_3 = arith.constant 0 : index
    %c0_4 = arith.constant 0 : index
    %2 = vector.load %arg0[%c0_2, %c0_3, %c0_4] : memref<3x16x16xf32, #tpu.memory_space<vmem>>, vector<3x16x16xf32>
    %c0_5 = arith.constant 0 : index
    %c10 = arith.constant 10 : index
    %c10_6 = arith.constant 10 : index
    %3 = vector.load %arg2[%c0_5, %c10, %c10_6] : memref<3x36x36xf32, #tpu.memory_space<vmem>>, vector<3x16x16xf32>
    tpu.vector_store %arg2[%c0_5, %c10, %c10_6], %2 {strides = array<i32>} : memref<3x36x36xf32, #tpu.memory_space<vmem>>, vector<3x16x16xf32>,
    %c0_7 = arith.constant 0 : index
    %c0_8 = arith.constant 0 : index
    %4 = vector.load %arg1[%c0_7, %c0_8] : memref<8x4xf32, #tpu.memory_space<vmem>>, vector<8x4xf32>
    %cst_9 = arith.constant 1.000000e+01 : f32
    %5 = vector.broadcast %cst_9 : f32 to vector<8x4xf32>
    %6 = arith.addf %4, %5 : vector<8x4xf32>
    %c0_10 = arith.constant 0 : index
    %c0_11 = arith.constant 0 : index
    %7 = vector.load %arg3[%c0_10, %c0_11] : memref<8x4xf32, #tpu.memory_space<vmem>>, vector<8x4xf32>
    tpu.vector_store %arg3[%c0_10, %c0_11], %6 {strides = array<i32>} : memref<8x4xf32, #tpu.memory_space<vmem>>, vector<8x4xf32>,
    return
  }
}

</mosaic_0001>

<bundles_post_ra>
// kernel: tpu_custom_call.1
= control target key start
LH: loop header
LB: loop body
LE: loop exit
PB: predicated region body
PF: predicated region fallthrough
CT: control target
= control target key end

     0   :  { %9 = vsyncpa [#allocation3], 0  ;;  %s223_s0 = inlined_call_operand.hbm [shape: f32[3,16,16], index: 0, kind: input, shape index: {}]   ;;  %s224_s1 = inlined_call_operand.vmem [shape: f32[8,4], index: 1, kind: input, shape index: {}]   ;;  %s225_s2 = inlined_call_operand.hbm [shape: f32[3,36,36], index: 2, kind: output, shape index: {0}]   ;;  %s226_s3 = inlined_call_operand.vmem [shape: f32[8,4], index: 3, kind: output, shape index: {1}]  }
   0x1   :  { %10 = vsyncpa [#allocation4], 0  ;;  %s161_s12 = smov [#allocation2]   ;;  %s113_s16 = scalar_lea.hbm %s223_s0, 768 }
   0x2   :  { %s16_s13 = sshll.u32 %s161_s12, 4  ;;  %p114_p0 = scmp.ne.s32.totalorder %s223_s0, %s113_s16  ;;  %s17_s13 = int_to_ptr.vmem [resolvable:$true] %s16_s13 }
   0x3   :  { %p117_p1 = scmp.lt.u32.totalorder %s113_s16, %s223_s0 }
   0x5   :  { %p119_p2 = pnand %p117_p1, %p114_p0 }
   0x7   :  { %122 = shalt.err (!%p119_p2)
}
   0x8   :  { %s123_s21 = scalar_lea.vmem %s17_s13, 768  ;;  %p128_p4 = scmp.lt.s32.totalorder %s17_s13, %s17_s13 }
   0x9   :  { %p124_p3 = scmp.ne.s32.totalorder %s17_s13, %s123_s21  ;;  %p129_p5 = scmp.lt.s32.totalorder %s123_s21, %s123_s21 }
   0xb   :  { %p130_p6 = por %p129_p5, %p128_p4 }
   0xd   :  { %p131_p7 = pnand %p130_p6, %p124_p3 }
   0xf   :  { %134 = shalt.err (!%p131_p7)
}
  0x10   :  { %s162_s22 = smov 128   ;;  %s163_s23 = smov 8  }
  0x11   :  { %22 = dma.hbm_to_vmem [thread:$0]  %s223_s0, 768, %s17_s13, [#allocation3], %s162_s22, %s162_s22, %s163_s23  }
  0x12   :  { %157 = dma.done.wait [#allocation3], 768  }
  0x13   :  { %158 = vsyncadd [#allocation3], 4294966528  ;;  %vm28_vm0 = vcmask 293888   ;;  %v164_v0 = vmov 255.0   ;;  %vm33_vm1 = vcmask 289792   ;;  %v82_v1 = vld [vmem:[%s224_s1] sm:$0xff] }
  0x14   :  { %29 = vst.msk [vmem:[#allocation5] sm:$0xff] %vm28_vm0, %v164_v0  ;;  %35 = vst.msk [vmem:[#allocation5 + $0x28] sm:$0xff] %vm28_vm0, %v164_v0  ;;  %vm84_vm2 = vcmask 31744   ;;  %v47_v2 = vld [vmem:[#allocation2 + $0x10] sm:$0xff]  ;;  %v45_v3 = vld [vmem:[#allocation2] sm:$0xff]  ;;  %v83_v4 = vadd.f32 10.0, %v82_v1 }
  0x15   :  { %36 = vst.msk [vmem:[#allocation5 + $0x30] sm:$0xff] %vm28_vm0, %v164_v0  ;;  %37 = vst.msk [vmem:[#allocation5 + $0x38] sm:$0xff] %vm28_vm0, %v164_v0  ;;  %s165_s27 = smov 10   ;;  %v48_v5 = vld [vmem:[#allocation2 + $0x18] sm:$0xff]  ;;  %v46_v6 = vld [vmem:[#allocation2 + $0x8] sm:$0xff]  ;;  %vm75_vm3 = vcmask 212048  }
  0x16   :  { %40 = vst.msk [vmem:[#allocation5 + $0x50] sm:$0xff] %vm28_vm0, %v164_v0  ;;  %30 = vst.msk [vmem:[#allocation5 + $0x8] sm:$0xff] %vm28_vm0, %v164_v0  ;;  %61 = vrot.lane.b32.xlu1 %v47_v2, %s165_s27  ;;  %57 = vrot.lane.b32.xlu0 %v45_v3, %s165_s27  ;;  %v50_v7 = vld [vmem:[#allocation2 + $0x28] sm:$0xff]  ;;  %v49_v8 = vld [vmem:[#allocation2 + $0x20] sm:$0xff]  ;;  %s166_s1 = smov [#allocation5]  }
  0x17   :  { %31 = vst.msk [vmem:[#allocation5 + $0x10] sm:$0xff] %vm28_vm0, %v164_v0  ;;  %32 = vst.msk [vmem:[#allocation5 + $0x18] sm:$0xff] %vm28_vm0, %v164_v0  ;;  %s91_s30 = sshll.u32 %s166_s1, 4  ;;  %s92_s30 = int_to_ptr.vmem [resolvable:$true] %s91_s30 }
  0x18   :  { %38 = vst.msk [vmem:[#allocation5 + $0x40] sm:$0xff] %vm28_vm0, %v164_v0  ;;  %41 = vst.msk [vmem:[#allocation5 + $0x58] sm:$0xff] %vm28_vm0, %v164_v0  ;;  %p140_p9 = scmp.lt.s32.totalorder %s92_s30, %s92_s30 }
  0x19   :  { %42 = vst.msk [vmem:[#allocation5 + $0x60] sm:$0xff] %vm28_vm0, %v164_v0  ;;  %43 = vst.msk [vmem:[#allocation5 + $0x68] sm:$0xff] %vm28_vm0, %v164_v0 }
  0x1a   :  { %34 = vst.msk [vmem:[#allocation5 + $0x20] sm:$0xf] %vm33_vm1, %v164_v0  ;;  %39 = vst.msk [vmem:[#allocation5 + $0x48] sm:$0xf] %vm33_vm1, %v164_v0  ;;  %63 = vrot.lane.b32.xlu1 %v48_v5, %s165_s27  ;;  %59 = vrot.lane.b32.xlu0 %v46_v6, %s165_s27 }
  0x1b   :  { %44 = vst.msk [vmem:[#allocation5 + $0x70] sm:$0xf] %vm33_vm1, %v164_v0 }
  0x1c   :  { %85 = vst.msk [vmem:[%s226_s3] sm:$0xff] %vm84_vm2, %v83_v4  ;;  %s135_s3 = scalar_lea.vmem %s92_s30, 1920 }
  0x1d   :  { %p136_p8 = scmp.ne.s32.totalorder %s92_s30, %s135_s3  ;;  %p141_p10 = scmp.lt.s32.totalorder %s135_s3, %s135_s3 }
  0x1e   :  { %67 = vrot.lane.b32.xlu1 %v50_v7, %s165_s27  ;;  %65 = vrot.lane.b32.xlu0 %v49_v8, %s165_s27 }
  0x1f   :  { %p142_p11 = por %p141_p10, %p140_p9 }
  0x21   :  { %p143_p12 = pnand %p142_p11, %p136_p8 }
  0x88   :  { %v62_v9 = vpop.permute.xlu1 %61  ;;  %v58_v10 = vpop.permute.xlu0 %57 }
  0x89   :  { %78 = vst.msk [vmem:[#allocation5 + $0x32] sm:$0xff] %vm75_vm3, %v62_v9  ;;  %76 = vst.msk [vmem:[#allocation5 + $0xa] sm:$0xff] %vm75_vm3, %v58_v10 }
  0x8c   :  { %v64_v11 = vpop.permute.xlu1 %63  ;;  %v60_v12 = vpop.permute.xlu0 %59 }
  0x8d   :  { %79 = vst.msk [vmem:[#allocation5 + $0x3a] sm:$0xff] %vm75_vm3, %v64_v11  ;;  %77 = vst.msk [vmem:[#allocation5 + $0x12] sm:$0xff] %vm75_vm3, %v60_v12 }
  0x90   :  { %v68_v13 = vpop.permute.xlu1 %67  ;;  %v66_v14 = vpop.permute.xlu0 %65 }
  0x91   :  { %81 = vst.msk [vmem:[#allocation5 + $0x62] sm:$0xff] %vm75_vm3, %v68_v13  ;;  %80 = vst.msk [vmem:[#allocation5 + $0x5a] sm:$0xff] %vm75_vm3, %v66_v14 }
  0x92   :  { %146 = shalt.err (!%p143_p12)
}
  0x93   :  { %s147_s6 = scalar_lea.hbm %s225_s2, 1920 }
  0x94   :  { %p148_p13 = scmp.ne.s32.totalorder %s225_s2, %s147_s6  ;;  %p151_p0 = scmp.lt.u32.totalorder %s147_s6, %s225_s2 }
  0x96   :  { %p153_p1 = pnand %p151_p0, %p148_p13 }
  0x98   :  { %156 = shalt.err (!%p153_p1)
}
  0x99   :  { %97 = dma.vmem_to_hbm [thread:$0]  %s92_s30, 1920, %s225_s2, [#allocation4], %s162_s22, %s162_s22, %s163_s23  }
  0x9a   :  { %159 = dma.done.wait [#allocation4], 1920  }
  0x9b   :  { %160 = vsyncadd [#allocation4], 4294965376 }
  0x9c   :  { %105 = vsyncpa [#allocation3], 1 }
  0x9d   :  { %106 = vsyncpa [#allocation4], 1 }

</bundles_post_ra>
